<compile_context>
chip_gen: v6e
topology: v6e:2x2x1
jax: 0.10.0
libtpu: 0.0.40
codegen_flags: <defaults>
</compile_context>

<pallas_src>
import jax
import jax.numpy as jnp
from jax.experimental import pallas as pl
from jax.experimental.pallas import tpu as pltpu

# ---- model hyperparameters (module defaults) ----
B = 2            # batch
S = 4            # seq_len
D_IN = 16        # input_dim
H = 128          # hidden_dim (= TPU lane width)
NH = 4           # n_heads
HD = H // NH     # head dim
A = 8            # num_actions
BS = B * S       # flattened (batch*seq) rows = 8 sublanes
EPS = 1e-5       # nn.LayerNorm default eps

_CW = 3 * H      # widest packed constant row (fused qkv bias = 384)


def _layernorm(x, gamma, beta):
    mu = jnp.mean(x, axis=-1, keepdims=True)
    var = jnp.mean((x - mu) ** 2, axis=-1, keepdims=True)
    return (x - mu) * jax.lax.rsqrt(var + EPS) * gamma + beta


def dqn_transformer_kernel(x_ref, wslab_ref, w2_ref, c_ref, o_ref):
    f32, bf16 = jnp.float32, jnp.bfloat16
    R = BS  # rows per pre-broadcast bias block

    # ---- packed constants (static, sublane/lane-aligned slices) ----
    be   = c_ref[0 * R:1 * R, 0:H]
    bqkv = c_ref[1 * R:2 * R, 0:3 * H]
    bo   = c_ref[2 * R:3 * R, 0:H]
    g1   = c_ref[3 * R:4 * R, 0:H]
    bt1  = c_ref[4 * R:5 * R, 0:H]
    b1   = c_ref[5 * R:6 * R, 0:2 * H]
    b2   = c_ref[6 * R:7 * R, 0:H]
    g2   = c_ref[7 * R:8 * R, 0:H]
    bt2  = c_ref[8 * R:9 * R, 0:H]
    fb1  = c_ref[9 * R:10 * R, 0:H]
    fb2  = c_ref[10 * R:11 * R, 0:H]
    hmask = c_ref[11 * R:11 * R + NH * BS, 0:H]                       # (32, 128)
    smask = c_ref[11 * R + NH * BS:11 * R + 2 * NH * BS, 0:BS]        # (32, 8)
    pool  = c_ref[11 * R + 2 * NH * BS:11 * R + 2 * NH * BS + BS, 0:BS]  # (8, 8)

    # ---- packed weight slab (bf16, static 128-lane slices) ----
    we   = wslab_ref[:, 0:H]
    wqkv = wslab_ref[:, H:4 * H]
    wo   = wslab_ref[:, 4 * H:5 * H]
    w1   = wslab_ref[:, 5 * H:7 * H]
    fw1  = wslab_ref[:, 7 * H:8 * H]
    fw2  = wslab_ref[:, 8 * H:9 * H]

    # ---- embedding: x (BS,128 zero-padded) @ we (128,128 zero-padded rows) ----
    x = x_ref[...].astype(bf16)
    emb = jnp.dot(x, we, preferred_element_type=f32) + be             # (BS, H) f32

    # ---- fused QKV projection ----
    qkv = jnp.dot(emb.astype(bf16), wqkv, preferred_element_type=f32) + bqkv
    scale = 1.0 / (HD ** 0.5)
    q = qkv[:, 0:H] * scale
    k = qkv[:, H:2 * H]
    v = qkv[:, 2 * H:3 * H]

    # ---- multi-head self-attention, heads flattened into sublanes ----
    # qm row (h*BS + r) = q[r] with only head-h lanes kept.
    qflat = jnp.concatenate([q] * NH, axis=0)                         # (NH*BS, H)
    qm = (qflat * hmask).astype(bf16)                                 # (32, 128)
    kb = k.astype(bf16)                                               # (8, 128)

    # scores[h*BS + r, c] = <q[r], k[c]> restricted to head-h lanes.
    scores = jax.lax.dot_general(qm, kb, (((1,), (1,)), ((), ())),
                                 preferred_element_type=f32)          # (32, 8)
    scores = scores + smask                                           # cross-batch -inf

    scores = scores - jnp.max(scores, axis=-1, keepdims=True)
    p = jnp.exp(scores)
    p = p * pl.reciprocal(jnp.sum(p, axis=-1, keepdims=True), approx=True)

    heads_flat = jnp.dot(p.astype(bf16), v.astype(bf16),
                         preferred_element_type=f32)                  # (32, 128)
    heads_flat = heads_flat * hmask                                   # keep own-head lanes
    attn = (heads_flat[0 * BS:1 * BS] + heads_flat[1 * BS:2 * BS]
            + heads_flat[2 * BS:3 * BS] + heads_flat[3 * BS:4 * BS])  # (BS, H) concat layout

    attn = jnp.dot(attn.astype(bf16), wo, preferred_element_type=f32) + bo

    # ---- post-norm encoder layer (dropout = identity in eval mode) ----
    y = _layernorm(emb + attn, g1, bt1)                               # (BS, H)

    h1 = jnp.maximum(jnp.dot(y.astype(bf16), w1, preferred_element_type=f32) + b1, 0.0)
    ff = jnp.dot(h1.astype(bf16), w2_ref[...], preferred_element_type=f32) + b2
    z = _layernorm(y + ff, g2, bt2)                                   # (BS, H)

    # ---- mean over sequence via constant pooling matmul (keeps 8 sublanes) ----
    pooled = jnp.dot(pool, z, preferred_element_type=f32)             # (BS, H); rows >= B are 0

    # ---- output head: ReLU -> Linear(H,H) -> ReLU -> Linear(H, A padded to H) ----
    hdn = jnp.maximum(pooled, 0.0)
    hdn = jnp.maximum(jnp.dot(hdn.astype(bf16), fw1, preferred_element_type=f32) + fb1, 0.0)
    o_ref[...] = jnp.dot(hdn.astype(bf16), fw2, preferred_element_type=f32) + fb2


def make_params(key):
    """Deterministic synthetic parameters (f32). Linear weights stored as (in, out)."""
    ks = jax.random.split(key, 16)
    scl = 0.05
    p = {}
    p['we'] = jax.random.normal(ks[0], (D_IN, H), jnp.float32) * scl
    p['be'] = jax.random.normal(ks[1], (1, H), jnp.float32) * scl
    p['wq'] = jax.random.normal(ks[2], (H, H), jnp.float32) * scl
    p['bq'] = jax.random.normal(ks[3], (1, H), jnp.float32) * scl
    p['wk'] = jax.random.normal(ks[4], (H, H), jnp.float32) * scl
    p['bk'] = jax.random.normal(ks[5], (1, H), jnp.float32) * scl
    p['wv'] = jax.random.normal(ks[6], (H, H), jnp.float32) * scl
    p['bv'] = jax.random.normal(ks[7], (1, H), jnp.float32) * scl
    p['wo'] = jax.random.normal(ks[8], (H, H), jnp.float32) * scl
    p['bo'] = jax.random.normal(ks[9], (1, H), jnp.float32) * scl
    p['g1'] = jnp.ones((1, H), jnp.float32)
    p['bt1'] = jnp.zeros((1, H), jnp.float32)
    p['w1'] = jax.random.normal(ks[10], (H, 2 * H), jnp.float32) * scl
    p['b1'] = jax.random.normal(ks[11], (1, 2 * H), jnp.float32) * scl
    p['w2'] = jax.random.normal(ks[12], (2 * H, H), jnp.float32) * scl
    p['b2'] = jax.random.normal(ks[13], (1, H), jnp.float32) * scl
    p['g2'] = jnp.ones((1, H), jnp.float32)
    p['bt2'] = jnp.zeros((1, H), jnp.float32)
    p['fw1'] = jax.random.normal(ks[14], (H, H), jnp.float32) * scl
    p['fb1'] = jnp.zeros((1, H), jnp.float32)
    p['fw2'] = jax.random.normal(ks[15], (H, A), jnp.float32) * scl
    p['fb2'] = jnp.zeros((1, A), jnp.float32)
    return p


def pack_params(p):
    """Pack weights into one bf16 slab (+ separate w2) and all constants into one f32 array."""
    bf16 = jnp.bfloat16

    # ---- weight slab (128 rows, lane-concatenated) ----
    we_pad = jnp.pad(p['we'], ((0, H - D_IN), (0, 0)))                 # (128, 128)
    wqkv = jnp.concatenate([p['wq'], p['wk'], p['wv']], axis=1)        # (128, 384)
    fw2_pad = jnp.pad(p['fw2'], ((0, 0), (0, H - A)))                  # (128, 128)
    wslab = jnp.concatenate(
        [we_pad, wqkv, p['wo'], p['w1'], p['fw1'], fw2_pad], axis=1).astype(bf16)  # (128, 1152)
    w2 = p['w2'].astype(bf16)                                          # (256, 128)

    # ---- constants: biases pre-broadcast to BS sublanes, then masks/pool ----
    def block(v):
        v = v.reshape(1, -1).astype(jnp.float32)
        v = jnp.broadcast_to(v, (BS, v.shape[1]))
        return jnp.pad(v, ((0, 0), (0, _CW - v.shape[1])))

    bias_blocks = [
        block(p['be']),
        block(jnp.concatenate([p['bq'], p['bk'], p['bv']], axis=1)),
        block(p['bo']), block(p['g1']), block(p['bt1']),
        block(p['b1']), block(p['b2']), block(p['g2']), block(p['bt2']),
        block(p['fb1']), block(p['fb2']),
    ]                                                                   # 11 x (8, 384)

    # stacked head mask: row (h*BS + r), lane c -> 1 iff c belongs to head h
    hmask = (jnp.arange(H)[None, :] // HD == jnp.arange(NH)[:, None]).astype(jnp.float32)
    hmask_flat = jnp.repeat(hmask, BS, axis=0)                          # (32, 128)
    hmask_blk = jnp.pad(hmask_flat, ((0, 0), (0, _CW - H)))

    # cross-batch additive mask, tiled over heads
    rb = jnp.arange(BS) // S
    cross = jnp.where(rb[:, None] == rb[None, :], 0.0, -1e30).astype(jnp.float32)  # (8, 8)
    smask_flat = jnp.tile(cross, (NH, 1))                               # (32, 8)
    smask_blk = jnp.pad(smask_flat, ((0, 0), (0, _CW - BS)))

    # mean-pool matrix: row b (b < B) averages that batch's S rows of z
    rr = jnp.arange(BS)[:, None]
    cc = jnp.arange(BS)[None, :]
    pool = jnp.where((cc // S == rr) & (rr < B), 1.0 / S, 0.0).astype(jnp.float32)  # (8, 8)
    pool_blk = jnp.pad(pool, ((0, 0), (0, _CW - BS)))

    consts = jnp.concatenate(bias_blocks + [hmask_blk, smask_blk, pool_blk], axis=0)  # (160, 384)
    return wslab, w2, consts


@jax.jit
def dqn_forward(x, wslab, w2, consts):
    """x: (B, S, D_IN) float32 -> (B, A) float32."""
    x2d = jnp.pad(x.reshape(BS, D_IN), ((0, 0), (0, H - D_IN)))        # lane-dense (8, 128)
    vmem = pl.BlockSpec(memory_space=pltpu.MemorySpace.VMEM)
    out = pl.pallas_call(
        dqn_transformer_kernel,
        out_shape=jax.ShapeDtypeStruct((BS, H), jnp.float32),
        in_specs=[vmem] * 4,
        out_specs=vmem,
    )(x2d, wslab, w2, consts)
    return out[:B, :A]    # rows >= B / lanes >= A are meaningless padding


def dqn_forward_ref(x, p):
    """Pure-JAX f32 reference (mirrors PyTorch eval-mode forward)."""
    emb = x @ p['we'] + p['be']                                     # (B, S, H)
    q = emb @ p['wq'] + p['bq']
    k = emb @ p['wk'] + p['bk']
    v = emb @ p['wv'] + p['bv']

    def split(t):  # (B, S, H) -> (B, NH, S, HD)
        return t.reshape(B, S, NH, HD).transpose(0, 2, 1, 3)

    qh, kh, vh = split(q), split(k), split(v)
    sc = jnp.einsum('bhqd,bhkd->bhqk', qh, kh) / (HD ** 0.5)
    p_attn = jax.nn.softmax(sc, axis=-1)
    ao = jnp.einsum('bhqk,bhkd->bhqd', p_attn, vh)
    ao = ao.transpose(0, 2, 1, 3).reshape(B, S, H)
    ao = ao @ p['wo'] + p['bo']

    def ln(t, g, b):
        mu = jnp.mean(t, -1, keepdims=True)
        var = jnp.mean((t - mu) ** 2, -1, keepdims=True)
        return (t - mu) / jnp.sqrt(var + EPS) * g + b

    y = ln(emb + ao, p['g1'], p['bt1'])
    ff = jnp.maximum(y @ p['w1'] + p['b1'], 0.0) @ p['w2'] + p['b2']
    z = ln(y + ff, p['g2'], p['bt2'])
    pooled = z.mean(axis=1)
    h = jnp.maximum(jnp.maximum(pooled, 0.0) @ p['fw1'] + p['fb1'], 0.0)
    return h @ p['fw2'] + p['fb2']


if __name__ == "__main__":
    key = jax.random.PRNGKey(0)
    k_x, k_p = jax.random.split(key)
    x = jax.random.normal(k_x, (B, S, D_IN), jnp.float32)
    params = make_params(k_p)
    wslab, w2, consts = pack_params(params)

    out = dqn_forward(x, wslab, w2, consts)
    jax.block_until_ready(out)

    ref = dqn_forward_ref(x, params)
    assert out.shape == (B, A)
    # bf16 matmul operands + approx-reciprocal softmax -> loosened tolerance
    assert jnp.allclose(out, ref, atol=2e-2, rtol=2e-2), (out, ref)

    print("KERNEL_OK")
</pallas_src>

<mosaic_0001>
module attributes {stable_mosaic.version = 11 : i64} {
  func.func @dqn_transformer_kernel(%arg0: memref<8x128xf32, #tpu.memory_space<vmem>>, %arg1: memref<128x1152xbf16, #tpu.memory_space<vmem>>, %arg2: memref<256x128xbf16, #tpu.memory_space<vmem>>, %arg3: memref<160x384xf32, #tpu.memory_space<vmem>>, %arg4: memref<8x128xf32, #tpu.memory_space<vmem>>) attributes {dimension_semantics = [], scalar_prefetch = 0 : i64, scratch_operands = 0 : i64, tpu.core_type = #tpu.core_type<tc>} {
    %c0 = arith.constant 0 : index
    %c0_0 = arith.constant 0 : index
    %0 = vector.load %arg3[%c0, %c0_0] : memref<160x384xf32, #tpu.memory_space<vmem>>, vector<8x128xf32>
    %c8 = arith.constant 8 : index
    %c0_1 = arith.constant 0 : index
    %1 = vector.load %arg3[%c8, %c0_1] : memref<160x384xf32, #tpu.memory_space<vmem>>, vector<8x384xf32>
    %c16 = arith.constant 16 : index
    %c0_2 = arith.constant 0 : index
    %2 = vector.load %arg3[%c16, %c0_2] : memref<160x384xf32, #tpu.memory_space<vmem>>, vector<8x128xf32>
    %c24 = arith.constant 24 : index
    %c0_3 = arith.constant 0 : index
    %3 = vector.load %arg3[%c24, %c0_3] : memref<160x384xf32, #tpu.memory_space<vmem>>, vector<8x128xf32>
    %c32 = arith.constant 32 : index
    %c0_4 = arith.constant 0 : index
    %4 = vector.load %arg3[%c32, %c0_4] : memref<160x384xf32, #tpu.memory_space<vmem>>, vector<8x128xf32>
    %c40 = arith.constant 40 : index
    %c0_5 = arith.constant 0 : index
    %5 = vector.load %arg3[%c40, %c0_5] : memref<160x384xf32, #tpu.memory_space<vmem>>, vector<8x256xf32>
    %c48 = arith.constant 48 : index
    %c0_6 = arith.constant 0 : index
    %6 = vector.load %arg3[%c48, %c0_6] : memref<160x384xf32, #tpu.memory_space<vmem>>, vector<8x128xf32>
    %c56 = arith.constant 56 : index
    %c0_7 = arith.constant 0 : index
    %7 = vector.load %arg3[%c56, %c0_7] : memref<160x384xf32, #tpu.memory_space<vmem>>, vector<8x128xf32>
    %c64 = arith.constant 64 : index
    %c0_8 = arith.constant 0 : index
    %8 = vector.load %arg3[%c64, %c0_8] : memref<160x384xf32, #tpu.memory_space<vmem>>, vector<8x128xf32>
    %c72 = arith.constant 72 : index
    %c0_9 = arith.constant 0 : index
    %9 = vector.load %arg3[%c72, %c0_9] : memref<160x384xf32, #tpu.memory_space<vmem>>, vector<8x128xf32>
    %c80 = arith.constant 80 : index
    %c0_10 = arith.constant 0 : index
    %10 = vector.load %arg3[%c80, %c0_10] : memref<160x384xf32, #tpu.memory_space<vmem>>, vector<8x128xf32>
    %c88 = arith.constant 88 : index
    %c0_11 = arith.constant 0 : index
    %11 = vector.load %arg3[%c88, %c0_11] : memref<160x384xf32, #tpu.memory_space<vmem>>, vector<32x128xf32>
    %c120 = arith.constant 120 : index
    %c0_12 = arith.constant 0 : index
    %12 = vector.load %arg3[%c120, %c0_12] : memref<160x384xf32, #tpu.memory_space<vmem>>, vector<32x8xf32>
    %c152 = arith.constant 152 : index
    %c0_13 = arith.constant 0 : index
    %13 = vector.load %arg3[%c152, %c0_13] : memref<160x384xf32, #tpu.memory_space<vmem>>, vector<8x8xf32>
    %c0_14 = arith.constant 0 : index
    %c0_15 = arith.constant 0 : index
    %14 = vector.load %arg1[%c0_14, %c0_15] : memref<128x1152xbf16, #tpu.memory_space<vmem>>, vector<128x128xbf16>
    %c0_16 = arith.constant 0 : index
    %c128 = arith.constant 128 : index
    %15 = vector.load %arg1[%c0_16, %c128] : memref<128x1152xbf16, #tpu.memory_space<vmem>>, vector<128x384xbf16>
    %c0_17 = arith.constant 0 : index
    %c512 = arith.constant 512 : index
    %16 = vector.load %arg1[%c0_17, %c512] : memref<128x1152xbf16, #tpu.memory_space<vmem>>, vector<128x128xbf16>
    %c0_18 = arith.constant 0 : index
    %c640 = arith.constant 640 : index
    %17 = vector.load %arg1[%c0_18, %c640] : memref<128x1152xbf16, #tpu.memory_space<vmem>>, vector<128x256xbf16>
    %c0_19 = arith.constant 0 : index
    %c896 = arith.constant 896 : index
    %18 = vector.load %arg1[%c0_19, %c896] : memref<128x1152xbf16, #tpu.memory_space<vmem>>, vector<128x128xbf16>
    %c0_20 = arith.constant 0 : index
    %c1024 = arith.constant 1024 : index
    %19 = vector.load %arg1[%c0_20, %c1024] : memref<128x1152xbf16, #tpu.memory_space<vmem>>, vector<128x128xbf16>
    %c0_21 = arith.constant 0 : index
    %c0_22 = arith.constant 0 : index
    %20 = vector.load %arg0[%c0_21, %c0_22] : memref<8x128xf32, #tpu.memory_space<vmem>>, vector<8x128xf32>
    %21 = arith.truncf %20 : vector<8x128xf32> to vector<8x128xbf16>
    %cst = arith.constant dense<0.000000e+00> : vector<8x128xf32>
    %22 = tpu.matmul %21, %14, %cst {dimension_numbers = #tpu.dot_dimension_numbers<[1], [0], [0], [1], [0, 0, 1, 1], [], []>} : vector<8x128xbf16>, vector<128x128xbf16>, vector<8x128xf32> -> vector<8x128xf32>
    %23 = arith.addf %22, %0 : vector<8x128xf32>
    %24 = arith.truncf %23 : vector<8x128xf32> to vector<8x128xbf16>
    %cst_23 = arith.constant dense<0.000000e+00> : vector<8x384xf32>
    %25 = tpu.matmul %24, %15, %cst_23 {dimension_numbers = #tpu.dot_dimension_numbers<[1], [0], [0], [1], [0, 0, 1, 1], [], []>} : vector<8x128xbf16>, vector<128x384xbf16>, vector<8x384xf32> -> vector<8x384xf32>
    %26 = arith.addf %25, %1 : vector<8x384xf32>
    %27 = vector.extract_strided_slice %26 {offsets = [0, 0], sizes = [8, 128], strides = [1, 1]} : vector<8x384xf32> to vector<8x128xf32>
    %cst_24 = arith.constant 0.176776692 : f32
    %28 = vector.broadcast %cst_24 : f32 to vector<8x128xf32>
    %29 = arith.mulf %27, %28 : vector<8x128xf32>
    %30 = vector.extract_strided_slice %26 {offsets = [0, 128], sizes = [8, 128], strides = [1, 1]} : vector<8x384xf32> to vector<8x128xf32>
    %31 = vector.extract_strided_slice %26 {offsets = [0, 256], sizes = [8, 128], strides = [1, 1]} : vector<8x384xf32> to vector<8x128xf32>
    %32 = tpu.concatenate %29, %29, %29, %29 in 0 : vector<8x128xf32>, vector<8x128xf32>, vector<8x128xf32>, vector<8x128xf32> -> vector<32x128xf32>
    %33 = arith.mulf %32, %11 : vector<32x128xf32>
    %34 = arith.truncf %33 : vector<32x128xf32> to vector<32x128xbf16>
    %35 = arith.truncf %30 : vector<8x128xf32> to vector<8x128xbf16>
    %cst_25 = arith.constant dense<0.000000e+00> : vector<32x8xf32>
    %36 = tpu.matmul %34, %35, %cst_25 {dimension_numbers = #tpu.dot_dimension_numbers<[1], [1], [0], [0], [0, 0, 1, 0], [], []>} : vector<32x128xbf16>, vector<8x128xbf16>, vector<32x8xf32> -> vector<32x8xf32>
    %37 = arith.addf %36, %12 : vector<32x8xf32>
    %cst_26 = arith.constant dense<0xFF800000> : vector<32xf32>
    %38 = vector.multi_reduction <maximumf>, %37, %cst_26 [1] : vector<32x8xf32> to vector<32xf32>
    %39 = vector.shape_cast %38 : vector<32xf32> to vector<32x1xf32>
    %40 = vector.broadcast %39 : vector<32x1xf32> to vector<32x8xf32>
    %41 = arith.subf %37, %40 : vector<32x8xf32>
    %42 = math.exp %41 : vector<32x8xf32>
    %cst_27 = arith.constant dense<0.000000e+00> : vector<32xf32>
    %43 = vector.multi_reduction <add>, %42, %cst_27 [1] : vector<32x8xf32> to vector<32xf32>
    %44 = vector.shape_cast %43 : vector<32xf32> to vector<32x1xf32>
    %45 = tpu.reciprocal %44 {approx = true} : vector<32x1xf32> -> vector<32x1xf32>
    %46 = vector.broadcast %45 : vector<32x1xf32> to vector<32x8xf32>
    %47 = arith.mulf %42, %46 : vector<32x8xf32>
    %48 = arith.truncf %47 : vector<32x8xf32> to vector<32x8xbf16>
    %49 = arith.truncf %31 : vector<8x128xf32> to vector<8x128xbf16>
    %cst_28 = arith.constant dense<0.000000e+00> : vector<32x128xf32>
    %50 = tpu.matmul %48, %49, %cst_28 {dimension_numbers = #tpu.dot_dimension_numbers<[1], [0], [0], [1], [0, 0, 1, 1], [], []>} : vector<32x8xbf16>, vector<8x128xbf16>, vector<32x128xf32> -> vector<32x128xf32>
    %51 = arith.mulf %50, %11 : vector<32x128xf32>
    %52 = vector.extract_strided_slice %51 {offsets = [0, 0], sizes = [8, 128], strides = [1, 1]} : vector<32x128xf32> to vector<8x128xf32>
    %53 = vector.extract_strided_slice %51 {offsets = [8, 0], sizes = [8, 128], strides = [1, 1]} : vector<32x128xf32> to vector<8x128xf32>
    %54 = arith.addf %52, %53 : vector<8x128xf32>
    %55 = vector.extract_strided_slice %51 {offsets = [16, 0], sizes = [8, 128], strides = [1, 1]} : vector<32x128xf32> to vector<8x128xf32>
    %56 = arith.addf %54, %55 : vector<8x128xf32>
    %57 = vector.extract_strided_slice %51 {offsets = [24, 0], sizes = [8, 128], strides = [1, 1]} : vector<32x128xf32> to vector<8x128xf32>
    %58 = arith.addf %56, %57 : vector<8x128xf32>
    %59 = arith.truncf %58 : vector<8x128xf32> to vector<8x128xbf16>
    %cst_29 = arith.constant dense<0.000000e+00> : vector<8x128xf32>
    %60 = tpu.matmul %59, %16, %cst_29 {dimension_numbers = #tpu.dot_dimension_numbers<[1], [0], [0], [1], [0, 0, 1, 1], [], []>} : vector<8x128xbf16>, vector<128x128xbf16>, vector<8x128xf32> -> vector<8x128xf32>
    %61 = arith.addf %60, %2 : vector<8x128xf32>
    %62 = arith.addf %23, %61 : vector<8x128xf32>
    %cst_30 = arith.constant dense<0.000000e+00> : vector<8xf32>
    %63 = vector.multi_reduction <add>, %62, %cst_30 [1] : vector<8x128xf32> to vector<8xf32>
    %64 = vector.shape_cast %63 : vector<8xf32> to vector<8x1xf32>
    %cst_31 = arith.constant 1.280000e+02 : f32
    %65 = vector.broadcast %cst_31 : f32 to vector<8x1xf32>
    %66 = arith.divf %64, %65 : vector<8x1xf32>
    %67 = vector.broadcast %66 : vector<8x1xf32> to vector<8x128xf32>
    %68 = arith.subf %62, %67 : vector<8x128xf32>
    %69 = arith.mulf %68, %68 : vector<8x128xf32>
    %cst_32 = arith.constant dense<0.000000e+00> : vector<8xf32>
    %70 = vector.multi_reduction <add>, %69, %cst_32 [1] : vector<8x128xf32> to vector<8xf32>
    %71 = vector.shape_cast %70 : vector<8xf32> to vector<8x1xf32>
    %cst_33 = arith.constant 1.280000e+02 : f32
    %72 = vector.broadcast %cst_33 : f32 to vector<8x1xf32>
    %73 = arith.divf %71, %72 : vector<8x1xf32>
    %74 = vector.broadcast %66 : vector<8x1xf32> to vector<8x128xf32>
    %75 = arith.subf %62, %74 : vector<8x128xf32>
    %cst_34 = arith.constant 9.99999974E-6 : f32
    %76 = vector.broadcast %cst_34 : f32 to vector<8x1xf32>
    %77 = arith.addf %73, %76 : vector<8x1xf32>
    %78 = math.rsqrt %77 : vector<8x1xf32>
    %79 = vector.broadcast %78 : vector<8x1xf32> to vector<8x128xf32>
    %80 = arith.mulf %75, %79 : vector<8x128xf32>
    %81 = arith.mulf %80, %3 : vector<8x128xf32>
    %82 = arith.addf %81, %4 : vector<8x128xf32>
    %83 = arith.truncf %82 : vector<8x128xf32> to vector<8x128xbf16>
    %cst_35 = arith.constant dense<0.000000e+00> : vector<8x256xf32>
    %84 = tpu.matmul %83, %17, %cst_35 {dimension_numbers = #tpu.dot_dimension_numbers<[1], [0], [0], [1], [0, 0, 1, 1], [], []>} : vector<8x128xbf16>, vector<128x256xbf16>, vector<8x256xf32> -> vector<8x256xf32>
    %85 = arith.addf %84, %5 : vector<8x256xf32>
    %cst_36 = arith.constant 0.000000e+00 : f32
    %86 = vector.broadcast %cst_36 : f32 to vector<8x256xf32>
    %87 = arith.maximumf %85, %86 : vector<8x256xf32>
    %88 = arith.truncf %87 : vector<8x256xf32> to vector<8x256xbf16>
    %c0_37 = arith.constant 0 : index
    %c0_38 = arith.constant 0 : index
    %89 = vector.load %arg2[%c0_37, %c0_38] : memref<256x128xbf16, #tpu.memory_space<vmem>>, vector<256x128xbf16>
    %cst_39 = arith.constant dense<0.000000e+00> : vector<8x128xf32>
    %90 = tpu.matmul %88, %89, %cst_39 {dimension_numbers = #tpu.dot_dimension_numbers<[1], [0], [0], [1], [0, 0, 1, 1], [], []>} : vector<8x256xbf16>, vector<256x128xbf16>, vector<8x128xf32> -> vector<8x128xf32>
    %91 = arith.addf %90, %6 : vector<8x128xf32>
    %92 = arith.addf %82, %91 : vector<8x128xf32>
    %cst_40 = arith.constant dense<0.000000e+00> : vector<8xf32>
    %93 = vector.multi_reduction <add>, %92, %cst_40 [1] : vector<8x128xf32> to vector<8xf32>
    %94 = vector.shape_cast %93 : vector<8xf32> to vector<8x1xf32>
    %cst_41 = arith.constant 1.280000e+02 : f32
    %95 = vector.broadcast %cst_41 : f32 to vector<8x1xf32>
    %96 = arith.divf %94, %95 : vector<8x1xf32>
    %97 = vector.broadcast %96 : vector<8x1xf32> to vector<8x128xf32>
    %98 = arith.subf %92, %97 : vector<8x128xf32>
    %99 = arith.mulf %98, %98 : vector<8x128xf32>
    %cst_42 = arith.constant dense<0.000000e+00> : vector<8xf32>
    %100 = vector.multi_reduction <add>, %99, %cst_42 [1] : vector<8x128xf32> to vector<8xf32>
    %101 = vector.shape_cast %100 : vector<8xf32> to vector<8x1xf32>
    %cst_43 = arith.constant 1.280000e+02 : f32
    %102 = vector.broadcast %cst_43 : f32 to vector<8x1xf32>
    %103 = arith.divf %101, %102 : vector<8x1xf32>
    %104 = vector.broadcast %96 : vector<8x1xf32> to vector<8x128xf32>
    %105 = arith.subf %92, %104 : vector<8x128xf32>
    %cst_44 = arith.constant 9.99999974E-6 : f32
    %106 = vector.broadcast %cst_44 : f32 to vector<8x1xf32>
    %107 = arith.addf %103, %106 : vector<8x1xf32>
    %108 = math.rsqrt %107 : vector<8x1xf32>
    %109 = vector.broadcast %108 : vector<8x1xf32> to vector<8x128xf32>
    %110 = arith.mulf %105, %109 : vector<8x128xf32>
    %111 = arith.mulf %110, %7 : vector<8x128xf32>
    %112 = arith.addf %111, %8 : vector<8x128xf32>
    %cst_45 = arith.constant dense<0.000000e+00> : vector<8x128xf32>
    %113 = tpu.matmul %13, %112, %cst_45 {dimension_numbers = #tpu.dot_dimension_numbers<[1], [0], [0], [1], [0, 0, 1, 1], [], []>} : vector<8x8xf32>, vector<8x128xf32>, vector<8x128xf32> -> vector<8x128xf32>
    %cst_46 = arith.constant 0.000000e+00 : f32
    %114 = vector.broadcast %cst_46 : f32 to vector<8x128xf32>
    %115 = arith.maximumf %113, %114 : vector<8x128xf32>
    %116 = arith.truncf %115 : vector<8x128xf32> to vector<8x128xbf16>
    %cst_47 = arith.constant dense<0.000000e+00> : vector<8x128xf32>
    %117 = tpu.matmul %116, %18, %cst_47 {dimension_numbers = #tpu.dot_dimension_numbers<[1], [0], [0], [1], [0, 0, 1, 1], [], []>} : vector<8x128xbf16>, vector<128x128xbf16>, vector<8x128xf32> -> vector<8x128xf32>
    %118 = arith.addf %117, %9 : vector<8x128xf32>
    %cst_48 = arith.constant 0.000000e+00 : f32
    %119 = vector.broadcast %cst_48 : f32 to vector<8x128xf32>
    %120 = arith.maximumf %118, %119 : vector<8x128xf32>
    %121 = arith.truncf %120 : vector<8x128xf32> to vector<8x128xbf16>
    %cst_49 = arith.constant dense<0.000000e+00> : vector<8x128xf32>
    %122 = tpu.matmul %121, %19, %cst_49 {dimension_numbers = #tpu.dot_dimension_numbers<[1], [0], [0], [1], [0, 0, 1, 1], [], []>} : vector<8x128xbf16>, vector<128x128xbf16>, vector<8x128xf32> -> vector<8x128xf32>
    %123 = arith.addf %122, %10 : vector<8x128xf32>
    %c0_50 = arith.constant 0 : index
    %c0_51 = arith.constant 0 : index
    %124 = vector.load %arg4[%c0_50, %c0_51] : memref<8x128xf32, #tpu.memory_space<vmem>>, vector<8x128xf32>
    tpu.vector_store %arg4[%c0_50, %c0_51], %123 {strides = array<i32>} : memref<8x128xf32, #tpu.memory_space<vmem>>, vector<8x128xf32>,
    return
  }
}

</mosaic_0001>

<bundles_post_ra>
// kernel: dqn_forward.1
= control target key start
LH: loop header
LB: loop body
LE: loop exit
PB: predicated region body
PF: predicated region fallthrough
CT: control target
= control target key end

     0   :  { %9 = vsyncpa [#allocation3], 0  ;;  %s1958_s0 = inlined_call_operand.vmem [shape: f32[8,128], index: 0, kind: input, shape index: {}]   ;;  %s1959_s1 = inlined_call_operand.hbm [shape: bf16[128,1152], index: 1, kind: input, shape index: {}]   ;;  %s1960_s2 = inlined_call_operand.hbm [shape: bf16[256,128], index: 2, kind: input, shape index: {}]   ;;  %s1961_s3 = inlined_call_operand.hbm [shape: f32[160,384], index: 3, kind: input, shape index: {}]   ;;  %s1962_s4 = inlined_call_operand.vmem [shape: f32[8,128], index: 4, kind: output, shape index: {}]  }
   0x1   :  { %10 = vsyncpa [#allocation5], 0  ;;  %s1821_s15 = smov [#allocation4]  }
   0x2   :  { %s30_s16 = sshll.u32 %s1821_s15, 4  ;;  %s31_s16 = int_to_ptr.vmem [resolvable:$true] %s30_s16 }
   0x3   :  { %s1765_s17 = scalar_lea.vmem %s31_s16, 2048  ;;  %p1770_p1 = scmp.lt.s32.totalorder %s31_s16, %s31_s16 }
   0x4   :  { %p1766_p0 = scmp.ne.s32.totalorder %s31_s16, %s1765_s17  ;;  %p1771_p2 = scmp.lt.s32.totalorder %s1765_s17, %s1765_s17 }
   0x6   :  { %p1772_p3 = por %p1771_p2, %p1770_p1 }
   0x8   :  { %p1773_p4 = pnand %p1772_p3, %p1766_p0 }
   0xa   :  { %1776 = shalt.err (!%p1773_p4)
}
   0xb   :  { %s1822_s18 = smov 64   ;;  %s1823_s19 = smov 4  }
   0xc   :  { %36 = dma.hbm_to_vmem [thread:$0]  %s1960_s2, 2048, %s31_s16, [#allocation5], %s1822_s18, %s1822_s18, %s1823_s19  }
   0xd   :  { %s1824_s22 = smov [#allocation2]  }
   0xe   :  { %s18_s23 = sshll.u32 %s1824_s22, 4  ;;  %s19_s23 = int_to_ptr.vmem [resolvable:$true] %s18_s23 }
   0xf   :  { %s1785_s24 = scalar_lea.vmem %s19_s23, 9216  ;;  %p1790_p6 = scmp.lt.s32.totalorder %s19_s23, %s19_s23 }
  0x10   :  { %p1786_p5 = scmp.ne.s32.totalorder %s19_s23, %s1785_s24  ;;  %p1791_p7 = scmp.lt.s32.totalorder %s1785_s24, %s1785_s24 }
  0x12   :  { %p1792_p8 = por %p1791_p7, %p1790_p6 }
  0x14   :  { %p1793_p9 = pnand %p1792_p8, %p1786_p5 }
  0x16   :  { %1796 = shalt.err (!%p1793_p9)
}
  0x17   :  { %s1825_s25 = smov 576   ;;  %s1826_s26 = smov 36  }
  0x18   :  { %24 = dma.hbm_to_vmem [thread:$0]  %s1959_s1, 9216, %s19_s23, [#allocation3], %s1825_s25, %s1825_s25, %s1826_s26  }
  0x19   :  { %s1827_s29 = smov [#allocation6]  }
  0x1a   :  { %s42_s30 = sshll.u32 %s1827_s29, 4  ;;  %s43_s30 = int_to_ptr.vmem [resolvable:$true] %s42_s30 }
  0x1b   :  { %s1805_s2 = scalar_lea.vmem %s43_s30, 7680  ;;  %p1810_p11 = scmp.lt.s32.totalorder %s43_s30, %s43_s30 }
  0x1c   :  { %p1806_p10 = scmp.ne.s32.totalorder %s43_s30, %s1805_s2  ;;  %p1811_p12 = scmp.lt.s32.totalorder %s1805_s2, %s1805_s2 }
  0x1e   :  { %p1812_p13 = por %p1811_p12, %p1810_p11 }
  0x20   :  { %p1813_p0 = pnand %p1812_p13, %p1806_p10 }
  0x22   :  { %1816 = shalt.err (!%p1813_p0)
}
  0x23   :  { %s1828_s5 = smov 384   ;;  %s1829_s6 = smov 24  }
  0x24   :  { %48 = dma.hbm_to_vmem [thread:$0]  %s1961_s3, 7680, %s43_s30, [#allocation5], %s1828_s5, %s1828_s5, %s1829_s6  }
  0x25   :  { %1817 = dma.done.wait [#allocation3], 9216  }
  0x26   :  { %1818 = vsyncadd [#allocation3], 4294958080 }
  0x27   :  { %1819 = dma.done.wait [#allocation5], 9728  }
  0x28   :  { %1820 = vsyncadd [#allocation5], 4294957568  ;;  %v1830_v0 = vmov 0.0   ;;  %vm1831_vm0 = vmmov 0   ;;  %v1633_v1 = vld [vmem:[#allocation2 + $0x1f8] ss:$36 sps:$4 sm:$0xff]  }
  0x29   :  { %1503 = vmatprep.subr.bf16.mxu0 %v1830_v0  ;;  %1519 = vmatprep.mubr.msk.bf16.mxu0 %vm1831_vm0, %v1830_v0  ;;  %v1634_v2 = vld [vmem:[#allocation2 + $0x1b0] ss:$36 sps:$4 sm:$0xff]   ;;  %v1635_v3 = vld [vmem:[#allocation2 + $0x168] ss:$36 sps:$4 sm:$0xff]   ;;  %v1641_v4 = vld [vmem:[#allocation2 + $0x200] ss:$36 sps:$4 sm:$0xff]  }
  0x2a   :  { %1504 = vmatpush3.bf16.msra.mxu0 %v1633_v1  ;;  %v1643_v5 = vld [vmem:[#allocation2 + $0x1fc] ss:$36 sps:$4 sm:$0xff]   ;;  %413 = vmatprep.subr.bf16.mxu1 %v1641_v4  ;;  %v1647_v8 = vld [vmem:[#allocation2 + $0x1b4] ss:$36 sps:$4 sm:$0xff]   ;;  %v1651_v11 = vld [vmem:[#allocation2 + $0x16c] ss:$36 sps:$4 sm:$0xff]  }
  0x2b   :  { %1505 = vmatprep.subr.bf16.mxu0 %v1830_v0  ;;  %v1636_v6 = vld [vmem:[#allocation2 + $0x120] ss:$36 sps:$4 sm:$0xff]   ;;  %v1645_v7 = vld [vmem:[#allocation2 + $0x1b8] ss:$36 sps:$4 sm:$0xff]   ;;  %414 = vmatpush1.bf16.msra.mxu1 %v1643_v5  ;;  %v1649_v9 = vld [vmem:[#allocation2 + $0x170] ss:$36 sps:$4 sm:$0xff]  }
  0x2c   :  { %415 = vmatprep.subr.bf16.mxu1 %v1645_v7  ;;  %v1637_v10 = vld [vmem:[#allocation2 + $0xd8] ss:$36 sps:$4 sm:$0xff]   ;;  %v1653_v12 = vld [vmem:[#allocation2 + $0x128] ss:$36 sps:$4 sm:$0xff]   ;;  %v1638_v13 = vld [vmem:[#allocation2 + $0x90] ss:$36 sps:$4 sm:$0xff]  }
  0x2d   :  { %v1655_v14 = vld [vmem:[#allocation2 + $0x124] ss:$36 sps:$4 sm:$0xff]   ;;  %v1659_v19 = vld [vmem:[#allocation2 + $0xdc] ss:$36 sps:$4 sm:$0xff]   ;;  %v1663_v21 = vld [vmem:[#allocation2 + $0x94] ss:$36 sps:$4 sm:$0xff]  }
  0x2e   :  { %1506 = vmatpush3.bf16.msra.mxu0 %v1634_v2  ;;  %v1657_v15 = vld [vmem:[#allocation2 + $0xe0] ss:$36 sps:$4 sm:$0xff]   ;;  %v1639_v16 = vld [vmem:[#allocation2 + $0x48] ss:$36 sps:$4 sm:$0xff]   ;;  %v1661_v20 = vld [vmem:[#allocation2 + $0x98] ss:$36 sps:$4 sm:$0xff]  }
  0x2f   :  { %1507 = vmatprep.subr.bf16.mxu0 %v1830_v0  ;;  %416 = vmatpush1.bf16.msra.mxu1 %v1647_v8  ;;  %v1640_v17 = vld [vmem:[#allocation2] ss:$36 sps:$4 sm:$0xff]   ;;  %v1665_v22 = vld [vmem:[#allocation2 + $0x50] ss:$36 sps:$4 sm:$0xff]   ;;  %v1669_v32 = vld [vmem:[#allocation2 + $0x8] ss:$36 sps:$4 sm:$0xff]  }
  0x30   :  { %417 = vmatprep.subr.bf16.mxu1 %v1649_v9  ;;  %v194_v18 = vld [vmem:[%s1958_s0] sm:$0xff]  ;;  %v1667_v25 = vld [vmem:[#allocation2 + $0x4c] ss:$36 sps:$4 sm:$0xff]   ;;  %v1652_v27 = vld [vmem:[#allocation2 + $0x174] ss:$36 sps:$4 sm:$0xff]   ;;  %v1832_v35 = vmov 0  }
  0x31   :  { %v1644_v23 = vld [vmem:[#allocation2 + $0x204] ss:$36 sps:$4 sm:$0xff]   ;;  %v195_v24 = vpack.c.bf16 %v194_v18, %v194_v18  ;;  %v1648_v26 = vld [vmem:[#allocation2 + $0x1bc] ss:$36 sps:$4 sm:$0xff]   ;;  %v1656_v28 = vld [vmem:[#allocation2 + $0x12c] ss:$36 sps:$4 sm:$0xff]   ;;  %445 = vmatprep.mubr.bf16.mxu1 %v1832_v35 }
  0x32   :  { %1508 = vmatpush3.bf16.msra.mxu0 %v1635_v3  ;;  %v1660_v29 = vld [vmem:[#allocation2 + $0xe4] ss:$36 sps:$4 sm:$0xff]   ;;  %v1664_v30 = vld [vmem:[#allocation2 + $0x9c] ss:$36 sps:$4 sm:$0xff]   ;;  %v1668_v31 = vld [vmem:[#allocation2 + $0x54] ss:$36 sps:$4 sm:$0xff]  }
  0x33   :  { %1509 = vmatprep.subr.bf16.mxu0 %v1830_v0  ;;  %418 = vmatpush1.bf16.msra.mxu1 %v1651_v11  ;;  %v1671_v33 = vld [vmem:[#allocation2 + $0x4] ss:$36 sps:$4 sm:$0xff]   ;;  %v1672_v34 = vld [vmem:[#allocation2 + $0xc] ss:$36 sps:$4 sm:$0xff]   ;;  %v60_v43 = vld [vmem:[#allocation6 + $0x18] sm:$0xff]  ;;  %vm605_vm1 = vcmask 1043456  }
  0x34   :  { %419 = vmatprep.subr.bf16.mxu1 %v1653_v12  ;;  %v59_v36 = vld [vmem:[#allocation6] sm:$0xff]  ;;  %v62_v45 = vld [vmem:[#allocation6 + $0x28] sm:$0xff]  ;;  %v1898_v59 = vld [vmem:[#allocation6 + $0x138] sm:$0xff]  ;;  %vm551_vm2 = vcmask 64512  }
  0x35   :  { %v61_v47 = vld [vmem:[#allocation6 + $0x20] sm:$0xff]  ;;  %v1894_v54 = vld [vmem:[#allocation6 + $0x108] sm:$0xff]  ;;  %v1900_v60 = vld [vmem:[#allocation6 + $0x150] sm:$0xff] }
  0x36   :  { %1510 = vmatpush3.bf16.msra.mxu0 %v1636_v6  ;;  %v1896_v55 = vld [vmem:[#allocation6 + $0x120] sm:$0xff]  ;;  %v79_v8 = vld [vmem:[#allocation6 + $0x198] sm:$0xff] }
  0x37   :  { %1511 = vmatprep.subr.bf16.mxu0 %v1830_v0  ;;  %420 = vmatpush1.bf16.msra.mxu1 %v1655_v14 }
  0x38   :  { %421 = vmatprep.subr.bf16.mxu1 %v1657_v15 }
  0x3a   :  { %1512 = vmatpush3.bf16.msra.mxu0 %v1637_v10  ;;  %v77_v10 = vld [vmem:[#allocation6 + $0x168] sm:$0xff] }
  0x3b   :  { %1513 = vmatprep.subr.bf16.mxu0 %v1830_v0  ;;  %422 = vmatpush1.bf16.msra.mxu1 %v1659_v19 }
  0x3c   :  { %423 = vmatprep.subr.bf16.mxu1 %v1661_v20 }
  0x3e   :  { %1514 = vmatpush3.bf16.msra.mxu0 %v1638_v13  ;;  %v80_v13 = vld [vmem:[#allocation6 + $0x1b0] sm:$0xff] }
  0x3f   :  { %1515 = vmatprep.subr.bf16.mxu0 %v1830_v0  ;;  %424 = vmatpush1.bf16.msra.mxu1 %v1663_v21 }
  0x40   :  { %425 = vmatprep.subr.bf16.mxu1 %v1665_v22 }
  0x42   :  { %1516 = vmatpush3.bf16.msra.mxu0 %v1639_v16 }
  0x43   :  { %1517 = vmatprep.subr.bf16.mxu0 %v1830_v0  ;;  %426 = vmatpush1.bf16.msra.mxu1 %v1667_v25 }
  0x44   :  { %427 = vmatprep.subr.bf16.mxu1 %v1669_v32 }
  0x46   :  { %1518 = vmatpush3.bf16.msra.mxu0 %v1640_v17  ;;  %v78_v17 = vld [vmem:[#allocation6 + $0x180] sm:$0xff] }
  0x47   :  { %1523 = vmatprep.subr.bf16.mxu0 %v1830_v0  ;;  %428 = vmatpush1.bf16.msra.mxu1 %v1671_v33 }
  0x49   :  { %1520 = vmatmul.mubr.bf16.vlgmr.msra.gmra.mxu0 %v195_v24 }
  0x4a   :  { %1524 = vmatpush3.bf16.msra.mxu0 %v1644_v23  ;;  %1539 = vmatprep.mubr.msk.bf16.mxu0 %vm1831_vm0, %v1830_v0 }
  0x4b   :  { %1525 = vmatprep.subr.bf16.mxu0 %v1830_v0 }
  0x4e   :  { %1526 = vmatpush3.bf16.msra.mxu0 %v1648_v26 }
  0x4f   :  { %1527 = vmatprep.subr.bf16.mxu0 %v1830_v0 }
  0x52   :  { %1528 = vmatpush3.bf16.msra.mxu0 %v1652_v27 }
  0x53   :  { %1529 = vmatprep.subr.bf16.mxu0 %v1830_v0 }
  0x56   :  { %1530 = vmatpush3.bf16.msra.mxu0 %v1656_v28 }
  0x57   :  { %1531 = vmatprep.subr.bf16.mxu0 %v1830_v0 }
  0x5a   :  { %1532 = vmatpush3.bf16.msra.mxu0 %v1660_v29 }
  0x5b   :  { %1533 = vmatprep.subr.bf16.mxu0 %v1830_v0 }
  0x5e   :  { %1534 = vmatpush3.bf16.msra.mxu0 %v1664_v30 }
  0x5f   :  { %1535 = vmatprep.subr.bf16.mxu0 %v1830_v0 }
  0x62   :  { %1536 = vmatpush3.bf16.msra.mxu0 %v1668_v31 }
  0x63   :  { %1537 = vmatprep.subr.bf16.mxu0 %v1830_v0 }
  0x66   :  { %1538 = vmatpush3.bf16.msra.mxu0 %v1672_v34 }
 0x109   :  { %v278_v37 = vpop.f32.mrf.mxu0 }
 0x10a   :  { %v1890_v38 = vadd.f32 %v278_v37, %v59_v36 }
 0x10b   :  { %v1521_v39 = vpop.f32.mrf.mxu0 }
 0x10c   :  { %v284_v40 = vpack.c.bf16 %v1890_v38, %v1890_v38 }
 0x10d   :  { %v281_v41 = vpop.f32.mrf.mxu0 }
 0x10e   :  { %446 = vmatmul.mubr.bf16.vlgmr.msra.gmra.mxu1 %v284_v40  ;;  %1540 = vmatmul.mubr.bf16.vlgmr.msra.gmra.mxu0 %v284_v40 }
 0x10f   :  { %v1522_v42 = vpop.f32.mrf.mxu0  ;;  %882 = vmatprep.mubr.bf16.mxu0 %v1832_v35 }
 0x1ce   :  { %v447_v44 = vpop.f32.mrf.mxu1  ;;  %v488_v46 = vpop.f32.mrf.mxu0 }
 0x1cf   :  { %v448_v48 = vadd.f32 %v447_v44, %v60_v43  ;;  %v489_v52 = vadd.f32 %v488_v46, %v62_v45 }
 0x1d0   :  { %v449_v49 = vpop.f32.mrf.mxu1  ;;  %v1541_v50 = vpop.f32.mrf.mxu0 }
 0x1d1   :  { %v494_v51 = vmul.f32 0.17677669, %v448_v48  ;;  %v450_v53 = vadd.f32 %v449_v49, %v61_v47  ;;  %v598_v2 = vpack.c.bf16 %v489_v52, %v489_v52 }
 0x1d2   :  { %v451_v56 = vpop.f32.mrf.mxu1  ;;  %v491_v57 = vpop.f32.mrf.mxu0 }
 0x1d3   :  { %v501_v58 = vpack.c.bf16 %v450_v53, %v450_v53  ;;  %v495_v63 = vmul.f32 %v494_v51, %v1894_v54  ;;  %v496_v1 = vmul.f32 %v494_v51, %v1896_v55  ;;  %v497_v4 = vmul.f32 %v494_v51, %v1898_v59 }
 0x1d4   :  { %v452_v61 = vpop.f32.mrf.mxu1  ;;  %v1542_v62 = vpop.f32.mrf.mxu0  ;;  %v498_v5 = vmul.f32 %v494_v51, %v1900_v60  ;;  %v607_v7 = vsel %vm605_vm1, %v598_v2, 0 }
 0x1d5   :  { %1543 = vmatprep.subr.bf16.mxu1 %v501_v58  ;;  %v499_v3 = vpack.c.bf16 %v496_v1, %v495_v63  ;;  %v1673_v62 = vld [vmem:[#allocation2 + $0x208] ss:$36 sps:$4 sm:$0xff]   ;;  %v1674_v1 = vld [vmem:[#allocation2 + $0x1c0] ss:$36 sps:$4 sm:$0xff]  }
 0x1d6   :  { %1544 = vmatpush3.bf16.xpose.msra.mxu1 %v501_v58  ;;  %v500_v6 = vpack.c.bf16 %v498_v5, %v497_v4  ;;  %v1677_v4 = vld [vmem:[#allocation2 + $0xe8] ss:$36 sps:$4 sm:$0xff]   ;;  %v1678_v5 = vld [vmem:[#allocation2 + $0xa0] ss:$36 sps:$4 sm:$0xff]  }
 0x1d7   :  { %1620 = vmatprep.subr.msk.bf16.mxu1 %vm605_vm1, %v598_v2  ;;  %1545 = vmatprep.mubr.bf16.mxu1 %v499_v3  ;;  %v1675_v2 = vld [vmem:[#allocation2 + $0x178] ss:$36 sps:$4 sm:$0xff]   ;;  %v1676_v3 = vld [vmem:[#allocation2 + $0x130] ss:$36 sps:$4 sm:$0xff]  }
 0x1dd   :  { %1546 = vmatmul.mubr.bf16.vlgmr.msra.gmra.mxu1 %v500_v6  ;;  %v1679_v6 = vld [vmem:[#allocation2 + $0x58] ss:$36 sps:$4 sm:$0xff]  }
 0x1de   :  { %1550 = vmatpush3.bf16.msra.mxu1 %v607_v7  ;;  %v1680_v7 = vld [vmem:[#allocation2 + $0x10] ss:$36 sps:$4 sm:$0xff]  }
 0x1df   :  { %1555 = vmatprep.subr.bf16.mxu1 %v1830_v0 }
 0x29d   :  { %v1547_v9 = vpop.f32.mrf.mxu1 }
 0x29e   :  { %v545_v11 = vadd.f32 %v1547_v9, %v79_v8 }
 0x29f   :  { %v536_v12 = vpop.f32.mrf.mxu1 }
 0x2a0   :  { %v537_v14 = vadd.f32 %v536_v12, %v77_v10  ;;  %v558_v15 = vsel %vm551_vm2, %v545_v11, -inf }
 0x2a1   :  { %559 = vmax.xlane.f32.xlu1 %v558_v15  ;;  %v1548_v16 = vpop.f32.mrf.mxu1 }
 0x2a2   :  { %v548_v18 = vadd.f32 %v1548_v16, %v80_v13  ;;  %v552_v19 = vsel %vm551_vm2, %v537_v14, -inf }
 0x2a3   :  { %v539_v20 = vpop.f32.mrf.mxu1  ;;  %553 = vmax.xlane.f32.xlu0 %v552_v19 }
 0x2a4   :  { %v540_v21 = vadd.f32 %v539_v20, %v78_v17  ;;  %v561_v22 = vsel %vm551_vm2, %v548_v18, -inf  ;;  %v63_v20 = vld [vmem:[#allocation6 + $0x30] sm:$0xff] }
 0x2a5   :  { %562 = vmax.xlane.f32.xlu1 %v561_v22 }
 0x2a6   :  { %v555_v23 = vsel %vm551_vm2, %v540_v21, -inf }
 0x2a7   :  { %556 = vmax.xlane.f32.xlu0 %v555_v23 }
 0x32a   :  { %v560_v24 = vpop.xlane.xlu1 %559 }
 0x32b   :  { %v566_v25 = vsub.f32 %v545_v11, %v560_v24 }
 0x32c   :  { %v554_v26 = vpop.xlane.xlu0 %553 }
 0x32d   :  { %v564_v27 = vsub.f32 %v537_v14, %v554_v26  ;;  %v572_v29 = vmul.f32 1.442695, %v566_v25  ;;  %v1681_v26 = vld [vmem:[#allocation2 + $0x20c] ss:$36 sps:$4 sm:$0xff]  }
 0x32e   :  { %v563_v28 = vpop.xlane.xlu1 %562 }
 0x32f   :  { %v568_v30 = vmul.f32 1.442695, %v564_v27  ;;  %v567_v31 = vsub.f32 %v548_v18, %v563_v28  ;;  %v1686_v27 = vld [vmem:[#allocation2 + $0x1c8] ss:$36 sps:$4 sm:$0xff]  }
 0x330   :  { %v557_v32 = vpop.xlane.xlu0 %556 }
 0x331   :  { %1737 = vpow2.f32 %v568_v30  ;;  %v565_v33 = vsub.f32 %v540_v21, %v557_v32  ;;  %v574_v34 = vmul.f32 1.442695, %v567_v31  ;;  %v1689_v31 = vld [vmem:[#allocation2 + $0x180] ss:$36 sps:$4 sm:$0xff]  }
 0x332   :  { %1739 = vpow2.f32 %v572_v29  ;;  %v1687_v32 = vld [vmem:[#allocation2 + $0x17c] ss:$36 sps:$4 sm:$0xff]  }
 0x333   :  { %v570_v35 = vmul.f32 1.442695, %v565_v33  ;;  %v1692_v33 = vld [vmem:[#allocation2 + $0x138] ss:$36 sps:$4 sm:$0xff]  }
 0x335   :  { %1741 = vpow2.f32 %v570_v35  ;;  %v1693_v35 = vld [vmem:[#allocation2 + $0xec] ss:$36 sps:$4 sm:$0xff]  }
 0x336   :  { %1743 = vpow2.f32 %v574_v34  ;;  %v1695_v34 = vld [vmem:[#allocation2 + $0xf0] ss:$36 sps:$4 sm:$0xff]  }
 0x33e   :  { %v1738_v36 = vpop.eup %1737 }
 0x33f   :  { %v576_v37 = vsel %vm551_vm2, %v1738_v36, 0.0  ;;  %v1740_v39 = vpop.eup %1739 }
 0x340   :  { %577 = vadd.xlane.f32.xlu0 %v576_v37  ;;  %v582_v41 = vsel %vm551_vm2, %v1740_v39, 0.0  ;;  %v1696_v37 = vld [vmem:[#allocation2 + $0xa4] ss:$36 sps:$4 sm:$0xff]  }
 0x342   :  { %v1742_v40 = vpop.eup %1741 }
 0x343   :  { %v579_v42 = vsel %vm551_vm2, %v1742_v40, 0.0  ;;  %v1744_v43 = vpop.eup %1743 }
 0x344   :  { %583 = vadd.xlane.f32.xlu0 %v582_v41  ;;  %580 = vadd.xlane.f32.xlu1 %v579_v42  ;;  %v585_v44 = vsel %vm551_vm2, %v1744_v43, 0.0  ;;  %v1704_v41 = vld [vmem:[#allocation2 + $0x18] ss:$36 sps:$4 sm:$0xff]  }
 0x345   :  { %v1702_v42 = vld [vmem:[#allocation2 + $0x14] ss:$36 sps:$4 sm:$0xff]  }
 0x348   :  { %586 = vadd.xlane.f32.xlu1 %v585_v44  ;;  %v1706_v44 = vld [vmem:[#allocation4 + $0x38] sm:$0xff]  }
 0x3c9   :  { %v578_v45 = vpop.xlane.xlu0 %577 }
 0x3ca   :  { %1745 = vrcp.f32 %v578_v45  ;;  %v1707_v45 = vld [vmem:[#allocation4 + $0x70] sm:$0xff]  }
 0x3cd   :  { %v581_v46 = vpop.xlane.xlu1 %580  ;;  %v584_v47 = vpop.xlane.xlu0 %583 }
 0x3ce   :  { %1747 = vrcp.f32 %v581_v46  ;;  %v1708_v46 = vld [vmem:[#allocation4 + $0x30] sm:$0xff]  }
 0x3cf   :  { %1749 = vrcp.f32 %v584_v47  ;;  %v1709_v47 = vld [vmem:[#allocation4 + $0x68] sm:$0xff]  }
 0x3d1   :  { %v587_v48 = vpop.xlane.xlu1 %586 }
 0x3d2   :  { %1751 = vrcp.f32 %v587_v48  ;;  %v1710_v48 = vld [vmem:[#allocation4 + $0x28] sm:$0xff]  }
 0x3d7   :  { %v1746_v49 = vpop.eup %1745 }
 0x3d8   :  { %v592_v51 = vmul.f32 %v1746_v49, %v1738_v36  ;;  %v1698_v36 = vld [vmem:[#allocation2 + $0xa8] ss:$36 sps:$4 sm:$0xff]   ;;  %v1711_v49 = vld [vmem:[#allocation4 + $0x60] sm:$0xff]  }
 0x3db   :  { %v1748_v50 = vpop.eup %1747 }
 0x3dc   :  { %v593_v52 = vmul.f32 %v1748_v50, %v1742_v40  ;;  %v1750_v53 = vpop.eup %1749  ;;  %v1699_v40 = vld [vmem:[#allocation2 + $0x5c] ss:$36 sps:$4 sm:$0xff]  }
 0x3dd   :  { %v594_v58 = vmul.f32 %v1750_v53, %v1740_v39  ;;  %v1701_v39 = vld [vmem:[#allocation2 + $0x60] ss:$36 sps:$4 sm:$0xff]   ;;  %v1715_v53 = vld [vmem:[#allocation4 + $0x50] sm:$0xff]  }
 0x3de   :  { %v596_v56 = vpack.c.bf16 %v593_v52, %v592_v51  ;;  %v1712_v50 = vld [vmem:[#allocation4 + $0x20] sm:$0xff]   ;;  %v1713_v51 = vld [vmem:[#allocation4 + $0x58] sm:$0xff]  }
 0x3df   :  { %v1752_v57 = vpop.eup %1751  ;;  %v1714_v52 = vld [vmem:[#allocation4 + $0x18] sm:$0xff]  }
 0x3e0   :  { %1551 = vmatprep.mubr.msk.bf16.mxu1 %vm551_vm2, %v596_v56  ;;  %v595_v61 = vmul.f32 %v1752_v57, %v1744_v43  ;;  %v1705_v43 = vld [vmem:[#allocation4 + $0x78] sm:$0xff]   ;;  %v1716_v56 = vld [vmem:[#allocation4 + $0x10] sm:$0xff]  }
 0x3e2   :  { %v597_v63 = vpack.c.bf16 %v595_v61, %v594_v58 }
 0x3e4   :  { %1552 = vmatmul.mubr.msk.bf16.vlgmr.msra.gmra.mxu1 %vm551_vm2, %v597_v63  ;;  %v64_v63 = vld [vmem:[#allocation6 + $0x48] sm:$0xff] }
 0x3e5   :  { %1556 = vmatpush3.bf16.msra.mxu1 %v1673_v62  ;;  %1571 = vmatprep.mubr.msk.bf16.mxu1 %vm1831_vm0, %v1830_v0 }
 0x3e6   :  { %1557 = vmatprep.subr.bf16.mxu1 %v1830_v0 }
 0x3e9   :  { %1558 = vmatpush3.bf16.msra.mxu1 %v1674_v1 }
 0x3ea   :  { %1559 = vmatprep.subr.bf16.mxu1 %v1830_v0 }
 0x3ed   :  { %1560 = vmatpush3.bf16.msra.mxu1 %v1675_v2  ;;  %v65_v2 = vld [vmem:[#allocation6 + $0x60] sm:$0xff] }
 0x3ee   :  { %1561 = vmatprep.subr.bf16.mxu1 %v1830_v0 }
 0x3f1   :  { %1562 = vmatpush3.bf16.msra.mxu1 %v1676_v3 }
 0x3f2   :  { %1563 = vmatprep.subr.bf16.mxu1 %v1830_v0 }
 0x3f5   :  { %1564 = vmatpush3.bf16.msra.mxu1 %v1677_v4 }
 0x3f6   :  { %1565 = vmatprep.subr.bf16.mxu1 %v1830_v0 }
 0x3f9   :  { %1566 = vmatpush3.bf16.msra.mxu1 %v1678_v5 }
 0x3fa   :  { %1567 = vmatprep.subr.bf16.mxu1 %v1830_v0 }
 0x3fd   :  { %1568 = vmatpush3.bf16.msra.mxu1 %v1679_v6  ;;  %v1717_v6 = vld [vmem:[#allocation4 + $0x48] sm:$0xff]  }
 0x3fe   :  { %1569 = vmatprep.subr.bf16.mxu1 %v1830_v0 }
 0x401   :  { %1570 = vmatpush3.bf16.msra.mxu1 %v1680_v7  ;;  %v1718_v7 = vld [vmem:[#allocation4 + $0x8] sm:$0xff]  }
 0x402   :  { %1461 = vmatprep.subr.bf16.mxu1 %v1705_v43  ;;  %v1724_v43 = vld [vmem:[#allocation2 + $0x13c] ss:$36 sps:$4 sm:$0xff]  }
 0x4a4   :  { %v1553_v8 = vpop.f32.mrf.mxu1 }
 0x4a5   :  { %v660_v14 = vmul.f32 %v1553_v8, %v1898_v59  ;;  %v1684_v59 = vld [vmem:[#allocation2 + $0x1c4] ss:$36 sps:$4 sm:$0xff]  }
 0x4a6   :  { %v643_v9 = vpop.f32.mrf.mxu1  ;;  %v1719_v8 = vld [vmem:[#allocation4 + $0x40] sm:$0xff]  }
 0x4a7   :  { %v658_v12 = vmul.f32 %v643_v9, %v1894_v54  ;;  %v1720_v9 = vld [vmem:[#allocation4] sm:$0xff]  }
 0x4a8   :  { %v1554_v10 = vpop.f32.mrf.mxu1 }
 0x4a9   :  { %v661_v16 = vmul.f32 %v1554_v10, %v1900_v60  ;;  %v66_v10 = vld [vmem:[#allocation6 + $0x78] sm:$0xff] }
 0x4aa   :  { %v646_v11 = vpop.f32.mrf.mxu1 }
 0x4ab   :  { %v659_v13 = vmul.f32 %v646_v11, %v1896_v55  ;;  %v1683_v55 = vld [vmem:[#allocation2 + $0x210] ss:$36 sps:$4 sm:$0xff]  }
 0x4ac   :  { %850 = vmatprep.subr.bf16.mxu0 %v1683_v55 }
 0x4ad   :  { %v662_v15 = vadd.f32 %v659_v13, %v658_v12  ;;  %851 = vmatpush1.bf16.msra.mxu0 %v1681_v26  ;;  %v67_v12 = vld [vmem:[#allocation6 + $0x80] sm:$0xff] }
 0x4ae   :  { %852 = vmatprep.subr.bf16.mxu0 %v1686_v27 }
 0x4af   :  { %v663_v17 = vadd.f32 %v662_v15, %v660_v14 }
 0x4b1   :  { %v664_v18 = vadd.f32 %v663_v17, %v661_v16  ;;  %853 = vmatpush1.bf16.msra.mxu0 %v1684_v59 }
 0x4b2   :  { %854 = vmatprep.subr.bf16.mxu0 %v1689_v31 }
 0x4b3   :  { %v665_v19 = vpack.c.bf16 %v664_v18, %v664_v18 }
 0x4b5   :  { %1572 = vmatmul.mubr.bf16.vlgmr.msra.gmra.mxu1 %v665_v19  ;;  %855 = vmatpush1.bf16.msra.mxu0 %v1687_v32 }
 0x4b6   :  { %856 = vmatprep.subr.bf16.mxu0 %v1692_v33  ;;  %1462 = vmatpush3.bf16.msra.mxu1 %v1706_v44  ;;  %v69_v33 = vld [vmem:[#allocation6 + $0xa8] sm:$0xff]  ;;  %v1725_v44 = vld [vmem:[#allocation2 + $0xf4] ss:$36 sps:$4 sm:$0xff]  }
 0x4b7   :  { %1463 = vmatprep.subr.bf16.mxu1 %v1707_v45  ;;  %v1726_v45 = vld [vmem:[#allocation2 + $0xac] ss:$36 sps:$4 sm:$0xff]  }
 0x4ba   :  { %1464 = vmatpush3.bf16.msra.mxu1 %v1708_v46  ;;  %v1727_v46 = vld [vmem:[#allocation2 + $0x64] ss:$36 sps:$4 sm:$0xff]  }
 0x4bb   :  { %1465 = vmatprep.subr.bf16.mxu1 %v1709_v47  ;;  %v1728_v47 = vld [vmem:[#allocation2 + $0x1c] ss:$36 sps:$4 sm:$0xff]  }
 0x4be   :  { %1466 = vmatpush3.bf16.msra.mxu1 %v1710_v48  ;;  %v1729_v48 = vld [vmem:[#allocation2 + $0x218] ss:$36 sps:$4 sm:$0xff]  }
 0x4bf   :  { %1467 = vmatprep.subr.bf16.mxu1 %v1711_v49  ;;  %v1730_v49 = vld [vmem:[#allocation2 + $0x1d0] ss:$36 sps:$4 sm:$0xff]  }
 0x4c2   :  { %1468 = vmatpush3.bf16.msra.mxu1 %v1712_v50  ;;  %v1731_v50 = vld [vmem:[#allocation2 + $0x188] ss:$36 sps:$4 sm:$0xff]  }
 0x4c3   :  { %1469 = vmatprep.subr.bf16.mxu1 %v1713_v51  ;;  %v1732_v51 = vld [vmem:[#allocation2 + $0x140] ss:$36 sps:$4 sm:$0xff]  }
 0x4c6   :  { %1470 = vmatpush3.bf16.msra.mxu1 %v1714_v52  ;;  %v1733_v52 = vld [vmem:[#allocation2 + $0xf8] ss:$36 sps:$4 sm:$0xff]  }
 0x4c7   :  { %1471 = vmatprep.subr.bf16.mxu1 %v1715_v53  ;;  %v1734_v53 = vld [vmem:[#allocation2 + $0xb0] ss:$36 sps:$4 sm:$0xff]  }
 0x4ca   :  { %1472 = vmatpush3.bf16.msra.mxu1 %v1716_v56 }
 0x4cb   :  { %1473 = vmatprep.subr.bf16.mxu1 %v1717_v6 }
 0x4ce   :  { %1474 = vmatpush3.bf16.msra.mxu1 %v1718_v7 }
 0x4cf   :  { %1475 = vmatprep.subr.bf16.mxu1 %v1719_v8 }
 0x4d2   :  { %1476 = vmatpush3.bf16.msra.mxu1 %v1720_v9  ;;  %v72_v9 = vld [vmem:[#allocation6 + $0xf0] sm:$0xff] }
 0x4d3   :  { %1600 = vmatprep.subr.bf16.mxu1 %v1830_v0 }
 0x575   :  { %v748_v21 = vpop.f32.mrf.mxu1 }
 0x576   :  { %v749_v22 = vadd.f32 %v748_v21, %v63_v20 }
 0x577   :  { %v1573_v23 = vpop.f32.mrf.mxu1 }
 0x578   :  { %v754_v24 = vadd.f32 %v749_v22, %v1890_v38  ;;  %v1690_v38 = vld [vmem:[#allocation2 + $0x134] ss:$36 sps:$4 sm:$0xff]  }
 0x579   :  { %v751_v25 = vpop.f32.mrf.mxu1  ;;  %857 = vmatpush1.bf16.msra.mxu0 %v1690_v38  ;;  %v68_v23 = vld [vmem:[#allocation6 + $0x90] sm:$0xff] }
 0x57a   :  { %755 = vadd.xlane.f32.xlu0 %v754_v24  ;;  %858 = vmatprep.subr.bf16.mxu0 %v1695_v34 }
 0x57b   :  { %v1574_v54 = vpop.f32.mrf.mxu1 }
 0x57d   :  { %859 = vmatpush1.bf16.msra.mxu0 %v1693_v35  ;;  %v70_v35 = vld [vmem:[#allocation6 + $0xc0] sm:$0xff] }
 0x57e   :  { %860 = vmatprep.subr.bf16.mxu0 %v1698_v36 }
 0x581   :  { %861 = vmatpush1.bf16.msra.mxu0 %v1696_v37 }
 0x582   :  { %862 = vmatprep.subr.bf16.mxu0 %v1701_v39  ;;  %v81_v39 = vld [vmem:[#allocation6 + $0x1c8] sm:$0xff] }
 0x585   :  { %863 = vmatpush1.bf16.msra.mxu0 %v1699_v40  ;;  %v1721_v40 = vld [vmem:[#allocation2 + $0x214] ss:$36 sps:$4 sm:$0xff]  }
 0x586   :  { %864 = vmatprep.subr.bf16.mxu0 %v1704_v41  ;;  %v1722_v41 = vld [vmem:[#allocation2 + $0x1cc] ss:$36 sps:$4 sm:$0xff]  }
 0x589   :  { %865 = vmatpush1.bf16.msra.mxu0 %v1702_v42  ;;  %v1723_v42 = vld [vmem:[#allocation2 + $0x184] ss:$36 sps:$4 sm:$0xff]  }
 0x58a   :  { %1575 = vmatprep.subr.mxu0 %v1830_v0 }
 0x603   :  { %v756_v60 = vpop.xlane.xlu0 %755 }
 0x604   :  { %v758_v28 = vmul.f32 0.0078125, %v756_v60 }
 0x606   :  { %v759_v29 = vsub.f32 %v754_v24, %v758_v28 }
 0x608   :  { %v760_v30 = vmul.f32 %v759_v29, %v759_v29 }
 0x60a   :  { %761 = vadd.xlane.f32.xlu1 %v760_v30 }
 0x693   :  { %v762_v57 = vpop.xlane.xlu1 %761 }
 0x694   :  { %v763_v58 = vmul.f32 0.0078125, %v762_v57 }
 0x696   :  { %v764_v61 = vadd.f32 1e-05, %v763_v58 }
 0x698   :  { %1753 = vrsqrt.f32 %v764_v61 }
 0x6a5   :  { %v1754_v62 = vpop.eup %1753 }
 0x6a6   :  { %v766_v1 = vmul.f32 %v1754_v62, %v759_v29  ;;  %v1735_v62 = vld [vmem:[#allocation2 + $0x68] ss:$36 sps:$4 sm:$0xff]  }
 0x6a8   :  { %v767_v3 = vmul.f32 %v766_v1, %v64_v63  ;;  %v1736_v63 = vld [vmem:[#allocation2 + $0x20] ss:$36 sps:$4 sm:$0xff]   ;;  %v71_v1 = vld [vmem:[#allocation6 + $0xd8] sm:$0xff] }
 0x6aa   :  { %v768_v4 = vadd.f32 %v767_v3, %v65_v2 }
 0x6ac   :  { %v769_v5 = vpack.c.bf16 %v768_v4, %v768_v4 }
 0x6ae   :  { %883 = vmatmul.mubr.bf16.vlgmr.msra.gmra.mxu0 %v769_v5 }
 0x6af   :  { %1577 = vmatprep.mubr.msk.f32.mxu0 %vm1831_vm0, %v1830_v0 }
 0x76e   :  { %v884_v11 = vpop.f32.mrf.mxu0 }
 0x76f   :  { %v885_v13 = vadd.f32 %v884_v11, %v66_v10 }
 0x770   :  { %v886_v14 = vpop.f32.mrf.mxu0 }
 0x771   :  { %v887_v15 = vadd.f32 %v886_v14, %v67_v12  ;;  %v891_v16 = vmax.f32 %v885_v13, 0.0 }
 0x772   :  { %v888_v17 = vpop.f32.mrf.mxu0 }
 0x773   :  { %v892_v18 = vmax.f32 %v887_v15, 0.0  ;;  %v893_v21 = vpack.c.bf16 %v891_v16, %v891_v16 }
 0x774   :  { %v889_v19 = vpop.f32.mrf.mxu0 }
 0x775   :  { %v894_v20 = vpack.c.bf16 %v892_v18, %v892_v18 }
 0x777   :  { %1055 = vmatprep.mubr.bf16.mxu1 %v894_v20 }
 0x778   :  { %1056 = vmatmul.mubr.bf16.vlgmr.msra.gmra.mxu1 %v893_v21 }
 0x779   :  { %1616 = vmatprep.mubr.msk.bf16.mxu1 %vm1831_vm0, %v1830_v0  ;;  %1601 = vmatpush3.bf16.msra.mxu1 %v1729_v48 }
 0x77a   :  { %1602 = vmatprep.subr.bf16.mxu1 %v1830_v0 }
 0x77d   :  { %1603 = vmatpush3.bf16.msra.mxu1 %v1730_v49 }
 0x77e   :  { %1604 = vmatprep.subr.bf16.mxu1 %v1830_v0 }
 0x781   :  { %1605 = vmatpush3.bf16.msra.mxu1 %v1731_v50 }
 0x782   :  { %1606 = vmatprep.subr.bf16.mxu1 %v1830_v0 }
 0x785   :  { %1607 = vmatpush3.bf16.msra.mxu1 %v1732_v51 }
 0x786   :  { %1608 = vmatprep.subr.bf16.mxu1 %v1830_v0 }
 0x789   :  { %1609 = vmatpush3.bf16.msra.mxu1 %v1733_v52 }
 0x78a   :  { %1610 = vmatprep.subr.bf16.mxu1 %v1830_v0 }
 0x78d   :  { %1611 = vmatpush3.bf16.msra.mxu1 %v1734_v53 }
 0x78e   :  { %1612 = vmatprep.subr.bf16.mxu1 %v1830_v0 }
 0x791   :  { %1613 = vmatpush3.bf16.msra.mxu1 %v1735_v62 }
 0x792   :  { %1614 = vmatprep.subr.bf16.mxu1 %v1830_v0 }
 0x795   :  { %1615 = vmatpush3.bf16.msra.mxu1 %v1736_v63 }
 0x838   :  { %v1477_v22 = vpop.f32.mrf.mxu1 }
 0x83a   :  { %v1478_v24 = vpop.f32.mrf.mxu1 }
 0x83b   :  { %v1479_v25 = vadd.f32 %v1478_v24, %v1477_v22 }
 0x83c   :  { %v1480_v54 = vpop.f32.mrf.mxu1 }
 0x83d   :  { %v1058_v26 = vadd.f32 %v1479_v25, %v68_v23 }
 0x83e   :  { %v1481_v55 = vpop.f32.mrf.mxu1 }
 0x83f   :  { %v1063_v27 = vadd.f32 %v1058_v26, %v768_v4 }
 0x841   :  { %1064 = vadd.xlane.f32.xlu0 %v1063_v27 }
 0x8ca   :  { %v1065_v59 = vpop.xlane.xlu0 %1064 }
 0x8cb   :  { %v1066_v60 = vmul.f32 0.0078125, %v1065_v59 }
 0x8cd   :  { %v1067_v28 = vsub.f32 %v1063_v27, %v1066_v60 }
 0x8cf   :  { %v1068_v29 = vmul.f32 %v1067_v28, %v1067_v28 }
 0x8d1   :  { %1069 = vadd.xlane.f32.xlu1 %v1068_v29 }
 0x95a   :  { %v1070_v30 = vpop.xlane.xlu1 %1069 }
 0x95b   :  { %v1071_v31 = vmul.f32 0.0078125, %v1070_v30 }
 0x95d   :  { %v1072_v32 = vadd.f32 1e-05, %v1071_v31 }
 0x95f   :  { %1755 = vrsqrt.f32 %v1072_v32 }
 0x96c   :  { %v1756_v38 = vpop.eup %1755 }
 0x96d   :  { %v1074_v34 = vmul.f32 %v1756_v38, %v1067_v28 }
 0x96f   :  { %v1075_v36 = vmul.f32 %v1074_v34, %v69_v33 }
 0x971   :  { %v1076_v37 = vadd.f32 %v1075_v36, %v70_v35 }
 0x973   :  { %1576 = vmatpush3.msra.mxu0 %v1076_v37 }
 0x974   :  { %1578 = vmatmul.mubr.msk.f32.vlgmr.msra.gmra.mxu0 %vm551_vm2, %v81_v39  ;;  %1580 = vmatprep.subr.bf16.mxu0 %v1830_v0 }
 0x975   :  { %1581 = vmatpush3.bf16.msra.mxu0 %v1721_v40  ;;  %1596 = vmatprep.mubr.msk.bf16.mxu0 %vm1831_vm0, %v1830_v0 }
 0x976   :  { %1582 = vmatprep.subr.bf16.mxu0 %v1830_v0 }
 0x979   :  { %1583 = vmatpush3.bf16.msra.mxu0 %v1722_v41 }
 0x97a   :  { %1584 = vmatprep.subr.bf16.mxu0 %v1830_v0 }
 0x97d   :  { %1585 = vmatpush3.bf16.msra.mxu0 %v1723_v42 }
 0x97e   :  { %1586 = vmatprep.subr.bf16.mxu0 %v1830_v0 }
 0x981   :  { %1587 = vmatpush3.bf16.msra.mxu0 %v1724_v43 }
 0x982   :  { %1588 = vmatprep.subr.bf16.mxu0 %v1830_v0 }
 0x985   :  { %1589 = vmatpush3.bf16.msra.mxu0 %v1725_v44 }
 0x986   :  { %1590 = vmatprep.subr.bf16.mxu0 %v1830_v0 }
 0x989   :  { %1591 = vmatpush3.bf16.msra.mxu0 %v1726_v45 }
 0x98a   :  { %1592 = vmatprep.subr.bf16.mxu0 %v1830_v0 }
 0x98d   :  { %1593 = vmatpush3.bf16.msra.mxu0 %v1727_v46 }
 0x98e   :  { %1594 = vmatprep.subr.bf16.mxu0 %v1830_v0 }
 0x991   :  { %1595 = vmatpush3.bf16.msra.mxu0 %v1728_v47 }
 0xa34   :  { %v1146_v56 = vpop.f32.mrf.mxu0 }
 0xa35   :  { %v1150_v57 = vmax.f32 %v1146_v56, 0.0 }
 0xa36   :  { %v1579_v58 = vpop.f32.mrf.mxu0 }
 0xa37   :  { %v1151_v61 = vpack.c.bf16 %v1150_v57, %v1150_v57 }
 0xa39   :  { %1597 = vmatmul.mubr.bf16.vlgmr.msra.gmra.mxu0 %v1151_v61 }
 0xaf9   :  { %v1234_v2 = vpop.f32.mrf.mxu0 }
 0xafa   :  { %v1235_v3 = vadd.f32 %v1234_v2, %v71_v1 }
 0xafb   :  { %v1598_v4 = vpop.f32.mrf.mxu0 }
 0xafc   :  { %v1240_v5 = vmax.f32 %v1235_v3, 0.0 }
 0xafd   :  { %v1237_v6 = vpop.f32.mrf.mxu0 }
 0xafe   :  { %v1241_v7 = vpack.c.bf16 %v1240_v5, %v1240_v5 }
 0xaff   :  { %v1599_v8 = vpop.f32.mrf.mxu0 }
 0xb00   :  { %1617 = vmatmul.mubr.bf16.vlgmr.msra.gmra.mxu1 %v1241_v7 }
 0xbc0   :  { %v1324_v10 = vpop.f32.mrf.mxu1 }
 0xbc1   :  { %v1325_v11 = vadd.f32 %v1324_v10, %v72_v9 }
 0xbc2   :  { %v1618_v12 = vpop.f32.mrf.mxu1 }
 0xbc3   :  { %1330 = vst [vmem:[%s1962_s4] sm:$0xff] %v1325_v11 }
 0xbc4   :  { %v1327_v0 = vpop.f32.mrf.mxu1 }
 0xbc6   :  { %v1619_v13 = vpop.f32.mrf.mxu1 }
 0xbc7   :  { %1335 = vsyncpa [#allocation3], 1 }
 0xbc8   :  { %1336 = vsyncpa [#allocation5], 1 }

</bundles_post_ra>
